<compile_context>
chip_gen: v5e
topology: v5e:2x2
jax: 0.10.0
libtpu: 0.0.40
codegen_flags: <defaults>
</compile_context>

<pallas_src>
import functools
import math

import jax
import jax.numpy as jnp
from jax import lax
from jax.experimental import pallas as pl
from jax.experimental.pallas import tpu as pltpu


_STATIC_HEAD_UNROLL = 8  # fully unroll the head loop up to this many heads


def _attend_one_head(qh, kh, vh, compute_dtype):
    """One head of softmax attention.

    qh/kh/vh: (Bt, L, hd) in compute_dtype (scale already folded into Wq/bq).
    Returns the normalized head output as (Bt, L, hd) f32.
    """
    # Scores: batched MXU matmul with f32 accumulation.
    s = jnp.einsum("bld,bmd->blm", qh, kh,
                   preferred_element_type=jnp.float32)            # (Bt, L, L)
    s = s - jnp.max(s, axis=-1, keepdims=True)                    # XLU reduce
    p = jnp.exp(s)                                                # EUP
    # Deferred normalization: multiply 1/rowsum into the (Bt, L, hd) output
    # instead of the (Bt, L, L) probabilities (saves ~L/hd VALU multiplies).
    r = pl.reciprocal(jnp.sum(p, axis=-1, keepdims=True), approx=True)
    oh = jnp.einsum("blm,bmd->bld", p.astype(compute_dtype), vh,
                    preferred_element_type=jnp.float32)           # (Bt, L, hd)
    return oh * r


def _mha_kernel(x_ref, wqkv_ref, bqkv_ref, wo_ref, bo_ref, o_ref,
                qkv_sc, cat_sc, *, num_heads: int):
    # x_ref:    (Bt, L, E)   block of batch elements
    # wqkv_ref: (E, 3E)      pre-transposed fused in_proj weight (scale folded)
    # bqkv_ref: (1, 3E)      fused in_proj bias (scale folded into Q third)
    # wo_ref:   (E, E)       pre-transposed out_proj weight
    # bo_ref:   (1, E)       out_proj bias
    # o_ref:    (Bt, L, E)
    # qkv_sc:   (Bt*L, 3E)   VMEM scratch, compute dtype
    # cat_sc:   (Bt*L, E)    VMEM scratch, compute dtype (head concat)
    Bt, L, E = x_ref.shape
    H = num_heads
    hd = E // H
    cdt = x_ref.dtype  # MXU operand dtype (bf16 inputs stay bf16)

    # ---- fused QKV projection: ONE (Bt*L, E) x (E, 3E) MXU pass -------------
    x2d = x_ref[...].reshape(Bt * L, E)
    qkv = jnp.dot(x2d, wqkv_ref[...], preferred_element_type=jnp.float32)
    qkv = qkv + bqkv_ref[...].astype(jnp.float32)
    # Park qkv in VMEM in the compute dtype: bounds its live range and gives the
    # head loop cheap ref slices that feed the MXU in its native dtype.
    qkv_sc[...] = qkv.astype(cdt)

    # ---- per-head attention; results concatenated into cat_sc ---------------
    if H <= _STATIC_HEAD_UNROLL:
        for h in range(H):                       # static, small: fully unrolled
            lo = h * hd
            qh = qkv_sc[:, lo:lo + hd].reshape(Bt, L, hd)
            kh = qkv_sc[:, E + lo:E + lo + hd].reshape(Bt, L, hd)
            vh = qkv_sc[:, 2 * E + lo:2 * E + lo + hd].reshape(Bt, L, hd)
            oh = _attend_one_head(qh, kh, vh, cdt)
            cat_sc[:, lo:lo + hd] = oh.reshape(Bt * L, hd).astype(cdt)
    else:
        # fori_loop bounds live ranges: only one head's (Bt, L, L) scores are
        # live at a time instead of H of them competing for the 64 vregs.
        def head_body(h, carry):
            lo = pl.multiple_of(h * hd, hd)
            qh = qkv_sc[:, pl.ds(lo, hd)].reshape(Bt, L, hd)
            kh = qkv_sc[:, pl.ds(E + lo, hd)].reshape(Bt, L, hd)
            vh = qkv_sc[:, pl.ds(2 * E + lo, hd)].reshape(Bt, L, hd)
            oh = _attend_one_head(qh, kh, vh, cdt)
            cat_sc[:, pl.ds(lo, hd)] = oh.reshape(Bt * L, hd).astype(cdt)
            return carry

        lax.fori_loop(0, H, head_body, 0)

    # ---- single full-width (K = E) output projection -------------------------
    out = jnp.dot(cat_sc[...], wo_ref[...], preferred_element_type=jnp.float32)
    out = out + bo_ref[...].astype(jnp.float32)
    o_ref[...] = out.reshape(Bt, L, E).astype(o_ref.dtype)


def _num_tensorcores() -> int:
    try:
        d = jax.devices()[0]
        n = getattr(d, "num_cores", None)
        if isinstance(n, int) and n > 0:
            return n
    except Exception:
        pass
    return 1


def _step_vmem_bytes(bt, L, E, H, isz):
    """Rough per-grid-step VMEM footprint (bytes) excluding weights."""
    rows = bt * L
    f32 = 4
    io = 2 * rows * E * isz * 2                  # x block + out block, 2 buffers
    scratch = rows * 3 * E * isz + rows * E * isz  # qkv + concat scratch
    transient = rows * 3 * E * f32               # f32 qkv before the cast
    transient += 2 * bt * L * L * f32            # one head's scores + probs
    transient += rows * max(E // H, 1) * f32     # one head's output
    return io + scratch + transient


def _pick_block_b(B, L, E, H, isz, vmem_budget=40 << 20, target_rows=256):
    """Batch elements per grid step.

    Grow the block so each projection matmul has up to ~256 rows (fills the
    256-wide MXU on v6e/v7x, amortizes the ~0.35us/step overhead) while fitting
    the VMEM budget. Only prefer >=2 grid steps on multi-TensorCore parts.
    """
    divisors = [d for d in range(1, B + 1) if B % d == 0]
    fits = [d for d in divisors
            if _step_vmem_bytes(d, L, E, H, isz) <= vmem_budget] or [1]
    row_ok = [d for d in fits if d * L <= target_rows] or [min(fits)]
    best = max(row_ok)
    if _num_tensorcores() >= 2 and B // best < 2:
        smaller = [d for d in row_ok if B // d >= 2]
        if smaller and (max(smaller) * L >= 128 or best * L < 128):
            best = max(smaller)
    return best


def multihead_attention(x, in_proj_weight, in_proj_bias, out_proj_weight,
                        out_proj_bias, num_heads):
    """x: (B, L, E) -> (B, L, E)  self-attention (torch MHA semantics)."""
    B, L, E = x.shape
    H = num_heads
    assert E % H == 0, "embed_dim must be divisible by num_heads"
    hd = E // H
    dt = x.dtype
    isz = jnp.dtype(dt).itemsize

    # --- one-time wrapper-side weight prep (constant-folded by XLA) ----------
    # torch Linear stores (out, in); the kernel wants (in, out) so it never
    # transposes on the XLU. Fold 1/sqrt(hd) into the Q columns (weight + bias)
    # in f32, then cast everything to the activation dtype so every MXU matmul
    # runs on the native (e.g. bf16) path.
    scale = 1.0 / math.sqrt(hd)
    wqkv_t = in_proj_weight.T.astype(jnp.float32)            # (E, 3E)
    wqkv_t = wqkv_t.at[:, :E].multiply(scale)
    bqkv = in_proj_bias.reshape(1, 3 * E).astype(jnp.float32)
    bqkv = bqkv.at[:, :E].multiply(scale)
    wqkv_t = wqkv_t.astype(dt)
    bqkv = bqkv.astype(dt)
    wo_t = out_proj_weight.T.astype(dt)                      # (E, E)
    bo = out_proj_bias.reshape(1, E).astype(dt)

    block_b = _pick_block_b(B, L, E, H, isz)
    grid_b = B // block_b

    # VMEM limit from the actual footprint (step + single-buffered weights).
    weights_bytes = (E * 3 * E + 3 * E + E * E + E) * isz
    total_bytes = _step_vmem_bytes(block_b, L, E, H, isz) + weights_bytes
    vmem_limit = int(min(max(int(1.5 * total_bytes) + (2 << 20), 32 << 20),
                         64 << 20))

    # Advisory cost estimate for the XLA scheduler.
    flops = (2 * B * L * E * 3 * E            # fused QKV projection
             + 2 * B * H * L * L * hd * 2     # scores + p@v
             + 2 * B * L * E * E)             # output projection
    transcendentals = B * H * L * L           # exp
    bytes_accessed = (2 * B * L * E + E * 3 * E + 3 * E + E * E + E) * isz

    kernel = functools.partial(_mha_kernel, num_heads=H)

    return pl.pallas_call(
        kernel,
        out_shape=jax.ShapeDtypeStruct((B, L, E), dt),
        grid_spec=pltpu.PrefetchScalarGridSpec(
            num_scalar_prefetch=0,
            grid=(grid_b,),
            in_specs=[
                pl.BlockSpec((block_b, L, E), lambda b: (b, 0, 0)),
                # Grid-invariant weights/biases: single-buffered (no pointless
                # double buffering -> VMEM headroom for bigger activation blocks).
                pl.BlockSpec((E, 3 * E), lambda b: (0, 0),
                             pipeline_mode=pl.Buffered(1)),
                pl.BlockSpec((1, 3 * E), lambda b: (0, 0),
                             pipeline_mode=pl.Buffered(1)),
                pl.BlockSpec((E, E), lambda b: (0, 0),
                             pipeline_mode=pl.Buffered(1)),
                pl.BlockSpec((1, E), lambda b: (0, 0),
                             pipeline_mode=pl.Buffered(1)),
            ],
            out_specs=pl.BlockSpec((block_b, L, E), lambda b: (b, 0, 0)),
            scratch_shapes=[
                pltpu.VMEM((block_b * L, 3 * E), dt),   # qkv (compute dtype)
                pltpu.VMEM((block_b * L, E), dt),       # head concat
            ],
        ),
        compiler_params=pltpu.CompilerParams(
            dimension_semantics=("parallel",),
            vmem_limit_bytes=vmem_limit,
        ),
        cost_estimate=pl.CostEstimate(
            flops=int(flops),
            transcendentals=int(transcendentals),
            bytes_accessed=int(bytes_accessed),
        ),
    )(x, wqkv_t, bqkv, wo_t, bo)


def _reference(x, Wqkv, bqkv, Wo, bo, num_heads):
    B, L, E = x.shape
    hd = E // num_heads
    qkv = jnp.einsum("ble,fe->blf", x, Wqkv) + bqkv            # (B, L, 3E)
    q, k, v = jnp.split(qkv, 3, axis=-1)

    def heads(t):
        return t.reshape(B, L, num_heads, hd).transpose(0, 2, 1, 3)

    q, k, v = heads(q), heads(k), heads(v)
    s = jnp.einsum("bhld,bhmd->bhlm", q, k) / math.sqrt(hd)
    p = jax.nn.softmax(s, axis=-1)
    o = jnp.einsum("bhlm,bhmd->bhld", p, v)
    o = o.transpose(0, 2, 1, 3).reshape(B, L, E)
    return jnp.einsum("ble,fe->blf", o, Wo) + bo


if __name__ == "__main__":
    # Small shapes consistent with the module: embed_dim=32, num_heads=4.
    B, L, E, H = 2, 8, 32, 4

    key = jax.random.PRNGKey(0)
    k_x, k_w, k_wo = jax.random.split(key, 3)

    # Deterministic parameter init mirroring _reset_parameters:
    #   in_proj_weight: xavier_uniform_ ; in_proj_bias: 0 ; out_proj.bias: 0
    #   out_proj.weight: torch Linear default (uniform +/- 1/sqrt(E))
    xav_bound = math.sqrt(6.0 / (3 * E + E))
    in_proj_weight = jax.random.uniform(k_w, (3 * E, E), jnp.float32,
                                        -xav_bound, xav_bound)
    in_proj_bias = jnp.zeros((3 * E,), jnp.float32)
    lin_bound = 1.0 / math.sqrt(E)
    out_proj_weight = jax.random.uniform(k_wo, (E, E), jnp.float32,
                                         -lin_bound, lin_bound)
    out_proj_bias = jnp.zeros((E,), jnp.float32)

    x = jax.random.normal(k_x, (B, L, E), jnp.float32)

    out = multihead_attention(x, in_proj_weight, in_proj_bias,
                              out_proj_weight, out_proj_bias, H)
    out = jax.block_until_ready(out)

    ref = _reference(x, in_proj_weight, in_proj_bias,
                     out_proj_weight, out_proj_bias, H)
    assert out.shape == (B, L, E)
    # pl.reciprocal(approx=True) on the softmax denominator has ~1e-4-level
    # relative error vs. exact softmax; tolerance chosen accordingly while
    # still validating the math end-to-end.
    err = float(jnp.max(jnp.abs(out - ref)))
    assert jnp.allclose(out, ref, atol=2e-3, rtol=2e-3), err

    print("KERNEL_OK")
</pallas_src>

<mosaic_0001>
module attributes {stable_mosaic.version = 11 : i64} {
  func.func @_mha_kernel(%arg0: i32, %arg1: memref<2x8x32xf32, #tpu.memory_space<vmem>>, %arg2: memref<32x96xf32, #tpu.memory_space<vmem>>, %arg3: memref<1x96xf32, #tpu.memory_space<vmem>>, %arg4: memref<32x32xf32, #tpu.memory_space<vmem>>, %arg5: memref<1x32xf32, #tpu.memory_space<vmem>>, %arg6: memref<2x8x32xf32, #tpu.memory_space<vmem>>, %arg7: memref<16x96xf32, #tpu.memory_space<vmem>>, %arg8: memref<16x32xf32, #tpu.memory_space<vmem>>) attributes {dimension_semantics = [#tpu.dimension_semantics<parallel>], iteration_bounds = array<i64: 1>, scalar_prefetch = 0 : i64, scratch_operands = 2 : i64, tpu.core_type = #tpu.core_type<tc>, window_params = [{transform_indices = @transform_0, window_bounds = array<i64: 2, 8, 32>}, {pipeline_mode = #tpu.pipeline_mode<synchronous>, transform_indices = @transform_1, window_bounds = array<i64: 32, 96>}, {pipeline_mode = #tpu.pipeline_mode<synchronous>, transform_indices = @transform_2, window_bounds = array<i64: 1, 96>}, {pipeline_mode = #tpu.pipeline_mode<synchronous>, transform_indices = @transform_3, window_bounds = array<i64: 32, 32>}, {pipeline_mode = #tpu.pipeline_mode<synchronous>, transform_indices = @transform_4, window_bounds = array<i64: 1, 32>}, {transform_indices = @transform_5, window_bounds = array<i64: 2, 8, 32>}]} {
    %c0 = arith.constant 0 : index
    %c0_0 = arith.constant 0 : index
    %c0_1 = arith.constant 0 : index
    %0 = vector.load %arg1[%c0, %c0_0, %c0_1] : memref<2x8x32xf32, #tpu.memory_space<vmem>>, vector<2x8x32xf32>
    %1 = vector.shape_cast %0 : vector<2x8x32xf32> to vector<16x32xf32>
    %c0_2 = arith.constant 0 : index
    %c0_3 = arith.constant 0 : index
    %2 = vector.load %arg2[%c0_2, %c0_3] : memref<32x96xf32, #tpu.memory_space<vmem>>, vector<32x96xf32>
    %cst = arith.constant dense<0.000000e+00> : vector<16x96xf32>
    %3 = tpu.matmul %1, %2, %cst {dimension_numbers = #tpu.dot_dimension_numbers<[1], [0], [0], [1], [0, 0, 1, 1], [], []>} : vector<16x32xf32>, vector<32x96xf32>, vector<16x96xf32> -> vector<16x96xf32>
    %c0_4 = arith.constant 0 : index
    %c0_5 = arith.constant 0 : index
    %4 = vector.load %arg3[%c0_4, %c0_5] : memref<1x96xf32, #tpu.memory_space<vmem>>, vector<1x96xf32>
    %5 = vector.broadcast %4 : vector<1x96xf32> to vector<16x96xf32>
    %6 = arith.addf %3, %5 : vector<16x96xf32>
    %c0_6 = arith.constant 0 : index
    %c0_7 = arith.constant 0 : index
    %7 = vector.load %arg7[%c0_6, %c0_7] : memref<16x96xf32, #tpu.memory_space<vmem>>, vector<16x96xf32>
    tpu.vector_store %arg7[%c0_6, %c0_7], %6 {strides = array<i32>} : memref<16x96xf32, #tpu.memory_space<vmem>>, vector<16x96xf32>,
    %c0_8 = arith.constant 0 : index
    %c0_9 = arith.constant 0 : index
    %8 = vector.load %arg7[%c0_8, %c0_9] : memref<16x96xf32, #tpu.memory_space<vmem>>, vector<16x8xf32>
    %9 = vector.shape_cast %8 : vector<16x8xf32> to vector<2x8x8xf32>
    %c0_10 = arith.constant 0 : index
    %c32 = arith.constant 32 : index
    %10 = vector.load %arg7[%c0_10, %c32] : memref<16x96xf32, #tpu.memory_space<vmem>>, vector<16x8xf32>
    %11 = vector.shape_cast %10 : vector<16x8xf32> to vector<2x8x8xf32>
    %c0_11 = arith.constant 0 : index
    %c64 = arith.constant 64 : index
    %12 = vector.load %arg7[%c0_11, %c64] : memref<16x96xf32, #tpu.memory_space<vmem>>, vector<16x8xf32>
    %13 = vector.shape_cast %12 : vector<16x8xf32> to vector<2x8x8xf32>
    "tpu.trace_start"() <{level = 10 : i32, message = "bld,bmd->blm"}> : () -> ()
    %cst_12 = arith.constant dense<0.000000e+00> : vector<2x8x8xf32>
    %14 = tpu.matmul %9, %11, %cst_12 {dimension_numbers = #tpu.dot_dimension_numbers<[2], [2], [1], [1], [0, 0, 0, 1, 1, 1], [0], [0]>} : vector<2x8x8xf32>, vector<2x8x8xf32>, vector<2x8x8xf32> -> vector<2x8x8xf32>
    "tpu.trace_stop"() : () -> ()
    %cst_13 = arith.constant dense<0xFF800000> : vector<2x8xf32>
    %15 = vector.multi_reduction <maximumf>, %14, %cst_13 [2] : vector<2x8x8xf32> to vector<2x8xf32>
    %16 = vector.shape_cast %15 : vector<2x8xf32> to vector<2x8x1xf32>
    %17 = vector.broadcast %16 : vector<2x8x1xf32> to vector<2x8x8xf32>
    %18 = arith.subf %14, %17 : vector<2x8x8xf32>
    %19 = math.exp %18 : vector<2x8x8xf32>
    %cst_14 = arith.constant dense<0.000000e+00> : vector<2x8xf32>
    %20 = vector.multi_reduction <add>, %19, %cst_14 [2] : vector<2x8x8xf32> to vector<2x8xf32>
    %21 = vector.shape_cast %20 : vector<2x8xf32> to vector<2x8x1xf32>
    %22 = tpu.reciprocal %21 {approx = true} : vector<2x8x1xf32> -> vector<2x8x1xf32>
    "tpu.trace_start"() <{level = 10 : i32, message = "blm,bmd->bld"}> : () -> ()
    %cst_15 = arith.constant dense<0.000000e+00> : vector<2x8x8xf32>
    %23 = tpu.matmul %19, %13, %cst_15 {dimension_numbers = #tpu.dot_dimension_numbers<[2], [1], [1], [2], [0, 0, 0, 1, 1, 2], [0], [0]>} : vector<2x8x8xf32>, vector<2x8x8xf32>, vector<2x8x8xf32> -> vector<2x8x8xf32>
    "tpu.trace_stop"() : () -> ()
    %24 = vector.broadcast %22 : vector<2x8x1xf32> to vector<2x8x8xf32>
    %25 = arith.mulf %23, %24 : vector<2x8x8xf32>
    %26 = vector.shape_cast %25 : vector<2x8x8xf32> to vector<16x8xf32>
    %c0_16 = arith.constant 0 : index
    %c0_17 = arith.constant 0 : index
    %27 = vector.load %arg8[%c0_16, %c0_17] : memref<16x32xf32, #tpu.memory_space<vmem>>, vector<16x8xf32>
    tpu.vector_store %arg8[%c0_16, %c0_17], %26 {strides = array<i32>} : memref<16x32xf32, #tpu.memory_space<vmem>>, vector<16x8xf32>,
    %c0_18 = arith.constant 0 : index
    %c8 = arith.constant 8 : index
    %28 = vector.load %arg7[%c0_18, %c8] : memref<16x96xf32, #tpu.memory_space<vmem>>, vector<16x8xf32>
    %29 = vector.shape_cast %28 : vector<16x8xf32> to vector<2x8x8xf32>
    %c0_19 = arith.constant 0 : index
    %c40 = arith.constant 40 : index
    %30 = vector.load %arg7[%c0_19, %c40] : memref<16x96xf32, #tpu.memory_space<vmem>>, vector<16x8xf32>
    %31 = vector.shape_cast %30 : vector<16x8xf32> to vector<2x8x8xf32>
    %c0_20 = arith.constant 0 : index
    %c72 = arith.constant 72 : index
    %32 = vector.load %arg7[%c0_20, %c72] : memref<16x96xf32, #tpu.memory_space<vmem>>, vector<16x8xf32>
    %33 = vector.shape_cast %32 : vector<16x8xf32> to vector<2x8x8xf32>
    "tpu.trace_start"() <{level = 10 : i32, message = "bld,bmd->blm"}> : () -> ()
    %cst_21 = arith.constant dense<0.000000e+00> : vector<2x8x8xf32>
    %34 = tpu.matmul %29, %31, %cst_21 {dimension_numbers = #tpu.dot_dimension_numbers<[2], [2], [1], [1], [0, 0, 0, 1, 1, 1], [0], [0]>} : vector<2x8x8xf32>, vector<2x8x8xf32>, vector<2x8x8xf32> -> vector<2x8x8xf32>
    "tpu.trace_stop"() : () -> ()
    %cst_22 = arith.constant dense<0xFF800000> : vector<2x8xf32>
    %35 = vector.multi_reduction <maximumf>, %34, %cst_22 [2] : vector<2x8x8xf32> to vector<2x8xf32>
    %36 = vector.shape_cast %35 : vector<2x8xf32> to vector<2x8x1xf32>
    %37 = vector.broadcast %36 : vector<2x8x1xf32> to vector<2x8x8xf32>
    %38 = arith.subf %34, %37 : vector<2x8x8xf32>
    %39 = math.exp %38 : vector<2x8x8xf32>
    %cst_23 = arith.constant dense<0.000000e+00> : vector<2x8xf32>
    %40 = vector.multi_reduction <add>, %39, %cst_23 [2] : vector<2x8x8xf32> to vector<2x8xf32>
    %41 = vector.shape_cast %40 : vector<2x8xf32> to vector<2x8x1xf32>
    %42 = tpu.reciprocal %41 {approx = true} : vector<2x8x1xf32> -> vector<2x8x1xf32>
    "tpu.trace_start"() <{level = 10 : i32, message = "blm,bmd->bld"}> : () -> ()
    %cst_24 = arith.constant dense<0.000000e+00> : vector<2x8x8xf32>
    %43 = tpu.matmul %39, %33, %cst_24 {dimension_numbers = #tpu.dot_dimension_numbers<[2], [1], [1], [2], [0, 0, 0, 1, 1, 2], [0], [0]>} : vector<2x8x8xf32>, vector<2x8x8xf32>, vector<2x8x8xf32> -> vector<2x8x8xf32>
    "tpu.trace_stop"() : () -> ()
    %44 = vector.broadcast %42 : vector<2x8x1xf32> to vector<2x8x8xf32>
    %45 = arith.mulf %43, %44 : vector<2x8x8xf32>
    %46 = vector.shape_cast %45 : vector<2x8x8xf32> to vector<16x8xf32>
    %c0_25 = arith.constant 0 : index
    %c8_26 = arith.constant 8 : index
    %47 = vector.load %arg8[%c0_25, %c8_26] : memref<16x32xf32, #tpu.memory_space<vmem>>, vector<16x8xf32>
    tpu.vector_store %arg8[%c0_25, %c8_26], %46 {strides = array<i32>} : memref<16x32xf32, #tpu.memory_space<vmem>>, vector<16x8xf32>,
    %c0_27 = arith.constant 0 : index
    %c16 = arith.constant 16 : index
    %48 = vector.load %arg7[%c0_27, %c16] : memref<16x96xf32, #tpu.memory_space<vmem>>, vector<16x8xf32>
    %49 = vector.shape_cast %48 : vector<16x8xf32> to vector<2x8x8xf32>
    %c0_28 = arith.constant 0 : index
    %c48 = arith.constant 48 : index
    %50 = vector.load %arg7[%c0_28, %c48] : memref<16x96xf32, #tpu.memory_space<vmem>>, vector<16x8xf32>
    %51 = vector.shape_cast %50 : vector<16x8xf32> to vector<2x8x8xf32>
    %c0_29 = arith.constant 0 : index
    %c80 = arith.constant 80 : index
    %52 = vector.load %arg7[%c0_29, %c80] : memref<16x96xf32, #tpu.memory_space<vmem>>, vector<16x8xf32>
    %53 = vector.shape_cast %52 : vector<16x8xf32> to vector<2x8x8xf32>
    "tpu.trace_start"() <{level = 10 : i32, message = "bld,bmd->blm"}> : () -> ()
    %cst_30 = arith.constant dense<0.000000e+00> : vector<2x8x8xf32>
    %54 = tpu.matmul %49, %51, %cst_30 {dimension_numbers = #tpu.dot_dimension_numbers<[2], [2], [1], [1], [0, 0, 0, 1, 1, 1], [0], [0]>} : vector<2x8x8xf32>, vector<2x8x8xf32>, vector<2x8x8xf32> -> vector<2x8x8xf32>
    "tpu.trace_stop"() : () -> ()
    %cst_31 = arith.constant dense<0xFF800000> : vector<2x8xf32>
    %55 = vector.multi_reduction <maximumf>, %54, %cst_31 [2] : vector<2x8x8xf32> to vector<2x8xf32>
    %56 = vector.shape_cast %55 : vector<2x8xf32> to vector<2x8x1xf32>
    %57 = vector.broadcast %56 : vector<2x8x1xf32> to vector<2x8x8xf32>
    %58 = arith.subf %54, %57 : vector<2x8x8xf32>
    %59 = math.exp %58 : vector<2x8x8xf32>
    %cst_32 = arith.constant dense<0.000000e+00> : vector<2x8xf32>
    %60 = vector.multi_reduction <add>, %59, %cst_32 [2] : vector<2x8x8xf32> to vector<2x8xf32>
    %61 = vector.shape_cast %60 : vector<2x8xf32> to vector<2x8x1xf32>
    %62 = tpu.reciprocal %61 {approx = true} : vector<2x8x1xf32> -> vector<2x8x1xf32>
    "tpu.trace_start"() <{level = 10 : i32, message = "blm,bmd->bld"}> : () -> ()
    %cst_33 = arith.constant dense<0.000000e+00> : vector<2x8x8xf32>
    %63 = tpu.matmul %59, %53, %cst_33 {dimension_numbers = #tpu.dot_dimension_numbers<[2], [1], [1], [2], [0, 0, 0, 1, 1, 2], [0], [0]>} : vector<2x8x8xf32>, vector<2x8x8xf32>, vector<2x8x8xf32> -> vector<2x8x8xf32>
    "tpu.trace_stop"() : () -> ()
    %64 = vector.broadcast %62 : vector<2x8x1xf32> to vector<2x8x8xf32>
    %65 = arith.mulf %63, %64 : vector<2x8x8xf32>
    %66 = vector.shape_cast %65 : vector<2x8x8xf32> to vector<16x8xf32>
    %c0_34 = arith.constant 0 : index
    %c16_35 = arith.constant 16 : index
    %67 = vector.load %arg8[%c0_34, %c16_35] : memref<16x32xf32, #tpu.memory_space<vmem>>, vector<16x8xf32>
    tpu.vector_store %arg8[%c0_34, %c16_35], %66 {strides = array<i32>} : memref<16x32xf32, #tpu.memory_space<vmem>>, vector<16x8xf32>,
    %c0_36 = arith.constant 0 : index
    %c24 = arith.constant 24 : index
    %68 = vector.load %arg7[%c0_36, %c24] : memref<16x96xf32, #tpu.memory_space<vmem>>, vector<16x8xf32>
    %69 = vector.shape_cast %68 : vector<16x8xf32> to vector<2x8x8xf32>
    %c0_37 = arith.constant 0 : index
    %c56 = arith.constant 56 : index
    %70 = vector.load %arg7[%c0_37, %c56] : memref<16x96xf32, #tpu.memory_space<vmem>>, vector<16x8xf32>
    %71 = vector.shape_cast %70 : vector<16x8xf32> to vector<2x8x8xf32>
    %c0_38 = arith.constant 0 : index
    %c88 = arith.constant 88 : index
    %72 = vector.load %arg7[%c0_38, %c88] : memref<16x96xf32, #tpu.memory_space<vmem>>, vector<16x8xf32>
    %73 = vector.shape_cast %72 : vector<16x8xf32> to vector<2x8x8xf32>
    "tpu.trace_start"() <{level = 10 : i32, message = "bld,bmd->blm"}> : () -> ()
    %cst_39 = arith.constant dense<0.000000e+00> : vector<2x8x8xf32>
    %74 = tpu.matmul %69, %71, %cst_39 {dimension_numbers = #tpu.dot_dimension_numbers<[2], [2], [1], [1], [0, 0, 0, 1, 1, 1], [0], [0]>} : vector<2x8x8xf32>, vector<2x8x8xf32>, vector<2x8x8xf32> -> vector<2x8x8xf32>
    "tpu.trace_stop"() : () -> ()
    %cst_40 = arith.constant dense<0xFF800000> : vector<2x8xf32>
    %75 = vector.multi_reduction <maximumf>, %74, %cst_40 [2] : vector<2x8x8xf32> to vector<2x8xf32>
    %76 = vector.shape_cast %75 : vector<2x8xf32> to vector<2x8x1xf32>
    %77 = vector.broadcast %76 : vector<2x8x1xf32> to vector<2x8x8xf32>
    %78 = arith.subf %74, %77 : vector<2x8x8xf32>
    %79 = math.exp %78 : vector<2x8x8xf32>
    %cst_41 = arith.constant dense<0.000000e+00> : vector<2x8xf32>
    %80 = vector.multi_reduction <add>, %79, %cst_41 [2] : vector<2x8x8xf32> to vector<2x8xf32>
    %81 = vector.shape_cast %80 : vector<2x8xf32> to vector<2x8x1xf32>
    %82 = tpu.reciprocal %81 {approx = true} : vector<2x8x1xf32> -> vector<2x8x1xf32>
    "tpu.trace_start"() <{level = 10 : i32, message = "blm,bmd->bld"}> : () -> ()
    %cst_42 = arith.constant dense<0.000000e+00> : vector<2x8x8xf32>
    %83 = tpu.matmul %79, %73, %cst_42 {dimension_numbers = #tpu.dot_dimension_numbers<[2], [1], [1], [2], [0, 0, 0, 1, 1, 2], [0], [0]>} : vector<2x8x8xf32>, vector<2x8x8xf32>, vector<2x8x8xf32> -> vector<2x8x8xf32>
    "tpu.trace_stop"() : () -> ()
    %84 = vector.broadcast %82 : vector<2x8x1xf32> to vector<2x8x8xf32>
    %85 = arith.mulf %83, %84 : vector<2x8x8xf32>
    %86 = vector.shape_cast %85 : vector<2x8x8xf32> to vector<16x8xf32>
    %c0_43 = arith.constant 0 : index
    %c24_44 = arith.constant 24 : index
    %87 = vector.load %arg8[%c0_43, %c24_44] : memref<16x32xf32, #tpu.memory_space<vmem>>, vector<16x8xf32>
    tpu.vector_store %arg8[%c0_43, %c24_44], %86 {strides = array<i32>} : memref<16x32xf32, #tpu.memory_space<vmem>>, vector<16x8xf32>,
    %c0_45 = arith.constant 0 : index
    %c0_46 = arith.constant 0 : index
    %88 = vector.load %arg8[%c0_45, %c0_46] : memref<16x32xf32, #tpu.memory_space<vmem>>, vector<16x32xf32>
    %c0_47 = arith.constant 0 : index
    %c0_48 = arith.constant 0 : index
    %89 = vector.load %arg4[%c0_47, %c0_48] : memref<32x32xf32, #tpu.memory_space<vmem>>, vector<32x32xf32>
    %cst_49 = arith.constant dense<0.000000e+00> : vector<16x32xf32>
    %90 = tpu.matmul %88, %89, %cst_49 {dimension_numbers = #tpu.dot_dimension_numbers<[1], [0], [0], [1], [0, 0, 1, 1], [], []>} : vector<16x32xf32>, vector<32x32xf32>, vector<16x32xf32> -> vector<16x32xf32>
    %c0_50 = arith.constant 0 : index
    %c0_51 = arith.constant 0 : index
    %91 = vector.load %arg5[%c0_50, %c0_51] : memref<1x32xf32, #tpu.memory_space<vmem>>, vector<1x32xf32>
    %92 = vector.broadcast %91 : vector<1x32xf32> to vector<16x32xf32>
    %93 = arith.addf %90, %92 : vector<16x32xf32>
    %94 = vector.shape_cast %93 : vector<16x32xf32> to vector<2x8x32xf32>
    %c0_52 = arith.constant 0 : index
    %c0_53 = arith.constant 0 : index
    %c0_54 = arith.constant 0 : index
    %95 = vector.load %arg6[%c0_52, %c0_53, %c0_54] : memref<2x8x32xf32, #tpu.memory_space<vmem>>, vector<2x8x32xf32>
    tpu.vector_store %arg6[%c0_52, %c0_53, %c0_54], %94 {strides = array<i32>} : memref<2x8x32xf32, #tpu.memory_space<vmem>>, vector<2x8x32xf32>,
    return
  }
  func.func @transform_0(%arg0: i32) -> (i32, i32, i32) {
    %c0_i32 = arith.constant 0 : i32
    %c0_i32_0 = arith.constant 0 : i32
    %c0_i32_1 = arith.constant 0 : i32
    return %arg0, %c0_i32, %c0_i32_0 : i32, i32, i32
  }
  func.func @transform_1(%arg0: i32) -> (i32, i32) {
    %c0_i32 = arith.constant 0 : i32
    %c0_i32_0 = arith.constant 0 : i32
    %c0_i32_1 = arith.constant 0 : i32
    return %c0_i32, %c0_i32_0 : i32, i32
  }
  func.func @transform_2(%arg0: i32) -> (i32, i32) {
    %c0_i32 = arith.constant 0 : i32
    %c0_i32_0 = arith.constant 0 : i32
    %c0_i32_1 = arith.constant 0 : i32
    return %c0_i32, %c0_i32_0 : i32, i32
  }
  func.func @transform_3(%arg0: i32) -> (i32, i32) {
    %c0_i32 = arith.constant 0 : i32
    %c0_i32_0 = arith.constant 0 : i32
    %c0_i32_1 = arith.constant 0 : i32
    return %c0_i32, %c0_i32_0 : i32, i32
  }
  func.func @transform_4(%arg0: i32) -> (i32, i32) {
    %c0_i32 = arith.constant 0 : i32
    %c0_i32_0 = arith.constant 0 : i32
    %c0_i32_1 = arith.constant 0 : i32
    return %c0_i32, %c0_i32_0 : i32, i32
  }
  func.func @transform_5(%arg0: i32) -> (i32, i32, i32) {
    %c0_i32 = arith.constant 0 : i32
    %c0_i32_0 = arith.constant 0 : i32
    %c0_i32_1 = arith.constant 0 : i32
    return %arg0, %c0_i32, %c0_i32_0 : i32, i32, i32
  }
}

</mosaic_0001>

<bundles_post_ra>
// kernel: tpu_custom_call.1
= control target key start
LH: loop header
LB: loop body
LE: loop exit
PB: predicated region body
PF: predicated region fallthrough
CT: control target
= control target key end

     0   :  { %10 = vsyncpa [#allocation5], 0  ;;  %s1100_s0 = inlined_call_operand.hbm [shape: f32[2,8,32], index: 0, kind: input, shape index: {}]   ;;  %s1101_s1 = inlined_call_operand.hbm [shape: f32[32,96], index: 1, kind: input, shape index: {}]   ;;  %s1102_s2 = inlined_call_operand.vmem [shape: f32[1,96], index: 2, kind: input, shape index: {}]   ;;  %s1103_s3 = inlined_call_operand.hbm [shape: f32[32,32], index: 3, kind: input, shape index: {}]   ;;  %s1104_s4 = inlined_call_operand.vmem [shape: f32[1,32], index: 4, kind: input, shape index: {}]   ;;  %s1105_s5 = inlined_call_operand.hbm [shape: f32[2,8,32], index: 5, kind: output, shape index: {}]  }
   0x1   :  { %11 = vsyncpa [#allocation8], 0 }
   0x2   :  { %12 = vsyncpa [#allocation6], 0  ;;  %s30_s20 = sshll.u32 %s1101_s1, 4  ;;  %s933_s21 = smov [#allocation7]   ;;  %s31_s20 = int_to_ptr.hbm [resolvable:$true] %s30_s20 }
   0x3   :  { %s32_s22 = sshll.u32 %s933_s21, 4  ;;  %s17_s25 = sshll.u32 %s1100_s0, 4  ;;  %s33_s22 = int_to_ptr.vmem [resolvable:$true] %s32_s22  ;;  %s18_s25 = int_to_ptr.hbm [resolvable:$true] %s17_s25 }
   0x4   :  { %s934_s26 = smov 128   ;;  %s935_s27 = smov 8  }
   0x5   :  { %38 = dma.hbm_to_vmem [thread:$0]  %s31_s20, 512, %s33_s22, [#allocation8], %s934_s26, %s934_s26, %s935_s27  }
   0x6   :  { %s936_s28 = smov [#allocation4]   ;;  %s45_s1 = sshll.u32 %s1103_s3, 4  ;;  %s46_s1 = int_to_ptr.hbm [resolvable:$true] %s45_s1 }
   0x7   :  { %s19_s29 = sshll.u32 %s936_s28, 4  ;;  %s937_s0 = smov [#allocation9]   ;;  %s20_s29 = int_to_ptr.vmem [resolvable:$true] %s19_s29 }
   0x8   :  { %25 = dma.hbm_to_vmem [thread:$0]  %s18_s25, 256, %s20_s29, [#allocation5], %s934_s26, %s934_s26, %s935_s27  }
   0x9   :  { %s47_s7 = sshll.u32 %s937_s0, 4  ;;  %s48_s7 = int_to_ptr.vmem [resolvable:$true] %s47_s7 }
   0xa   :  { %53 = dma.hbm_to_vmem [thread:$0]  %s46_s1, 512, %s48_s7, [#allocation8], %s934_s26, %s934_s26, %s935_s27  }
   0xb   :  { %927 = dma.done.wait [#allocation5], 256  }
   0xc   :  { %928 = vsyncadd [#allocation5], 4294967040 }
   0xd   :  { %929 = dma.done.wait [#allocation8], 1024  }
   0xe   :  { %930 = vsyncadd [#allocation8], 4294966272  ;;  %v73_v0 = vld [vmem:[#allocation7 + $0x18] sm:$0xff]  ;;  %v72_v1 = vld [vmem:[#allocation7 + $0x10] sm:$0xff]  ;;  %vm78_vm0 = vcmask 261120   ;;  %vm108_vm1 = vcmask 785408  }
   0xf   :  { %97 = vmatpush.msra.mxu0 %v73_v0  ;;  %v71_v2 = vld [vmem:[#allocation7 + $0x8] sm:$0xff]  ;;  %v70_v3 = vld [vmem:[#allocation7] sm:$0xff]  ;;  %v68_v4 = vld [vmem:[#allocation4] sm:$0xff]  ;;  %s938_s9 = smov 88   ;;  %s939_s10 = smov 96   ;;  %vm116_vm2 = vcmask 64512  }
  0x10   :  { %v69_v5 = vld [vmem:[#allocation4 + $0x8] sm:$0xff]  ;;  %v797_v6 = vld [vmem:[%s1102_s2] ss:$0 sm:$0xff]  ;;  %s940_s2 = smov 80   ;;  %s941_s11 = smov 120   ;;  %vm386_vm3 = vcmask 130112  }
  0x11   :  { %98 = vmatpush.msra.mxu0 %v72_v1  ;;  %s942_s12 = smov 72   ;;  %s943_s13 = smov 112   ;;  %vm531_vm4 = vcmask 195712   ;;  %vm676_vm5 = vcmask 261312  }
  0x12   :  { %s944_s14 = smov 104   ;;  %s945_s15 = smov 56  }
  0x13   :  { %99 = vmatpush.msra.mxu0 %v71_v2  ;;  %s946_s16 = smov 64   ;;  %s947_s17 = smov 40  }
  0x14   :  { %s948_s18 = smov 48   ;;  %s949_s19 = smov 16  }
  0x15   :  { %100 = vmatpush.msra.mxu0 %v70_v3  ;;  %s950_s20 = smov 24   ;;  %s951_s23 = smov [#allocation10]  }
  0x16   :  { %740 = vmatmul.msk.f32.vlgmr.msra.gmra.mxu0 %vm78_vm0, %v68_v4  ;;  %s724_s24 = sshll.u32 %s951_s23, 4  ;;  %s726_s29 = sshll.u32 %s1105_s5, 4  ;;  %s725_s24 = int_to_ptr.vmem [resolvable:$true] %s724_s24  ;;  %s727_s29 = int_to_ptr.hbm [resolvable:$true] %s726_s29 }
  0x1e   :  { %741 = vmatmul.msk.f32.gmra.mxu0 %vm78_vm0, %v69_v5 }
  0x93   :  { %v102_v7 = vpop.f32.mrf.mxu0 }
  0x94   :  { %v103_v8 = vadd.f32 %v797_v6, %v102_v7 }
  0x96   :  { %109 = vst.msk [vmem:[#allocation2] sm:$0xff] %vm108_vm1, %v103_v8 }
  0x9b   :  { %v105_v9 = vpop.f32.mrf.mxu0 }
  0x9c   :  { %v106_v10 = vadd.f32 %v797_v6, %v105_v9 }
  0x9d   :  { %v1005_v11 = vld [vmem:[#allocation2] sm:$0xff] }
  0x9e   :  { %110 = vst.msk [vmem:[#allocation2 + $0x8] sm:$0xff] %vm108_vm1, %v106_v10  ;;  %249 = vrot.lane.b32.xlu2 %v1005_v11, %s938_s9  ;;  %114 = vrot.lane.b32.xlu0 %v1005_v11, %s939_s10 }
  0xa5   :  { %v1009_v12 = vld [vmem:[#allocation2 + $0x8] sm:$0xff] }
  0xa6   :  { %278 = vrot.lane.b32.xlu1 %v1009_v12, %s938_s9  ;;  %394 = vrot.lane.b32.xlu2 %v1005_v11, %s940_s2  ;;  %v792_v13 = vpack.i.bf16 %v1009_v12, %v1005_v11 }
  0xa7   :  { %142 = vrot.lane.b32.xlu0 %v1009_v12, %s939_s10 }
  0xae   :  { %276 = vrot.lane.b32.xlu1 %v1009_v12, %s941_s11  ;;  %539 = vrot.lane.b32.xlu2 %v1005_v11, %s942_s12 }
  0xaf   :  { %247 = vrot.lane.b32.xlu0 %v1005_v11, %s941_s11 }
  0xb6   :  { %392 = vrot.lane.b32.xlu1 %v1005_v11, %s943_s13  ;;  %421 = vrot.lane.b32.xlu2 %v1009_v12, %s943_s13 }
  0xb7   :  { %537 = vrot.lane.b32.xlu0 %v1005_v11, %s944_s14 }
  0xbe   :  { %423 = vrot.lane.b32.xlu1 %v1009_v12, %s940_s2  ;;  %793 = vrot.lane.b32.xlu2 %v792_v13, %s945_s15 }
  0xbf   :  { %568 = vrot.lane.b32.xlu0 %v1009_v12, %s942_s12 }
  0xc6   :  { %566 = vrot.lane.b32.xlu1 %v1009_v12, %s944_s14 }
  0xce   :  { %788 = vrot.lane.b32.xlu1 %v792_v13, %s946_s16 }
  0xf8   :  { %v250_v14 = vpop.permute.xlu2 %249 }
 0x100   :  { %v395_v15 = vpop.permute.xlu2 %394 }
 0x108   :  { %v540_v16 = vpop.permute.xlu2 %539 }
 0x110   :  { %v422_v17 = vpop.permute.xlu2 %421  ;;  %v115_v18 = vpop.permute.xlu0 %114 }
 0x111   :  { %742 = vmatpush.xpose.msk.msra.mxu1 %vm116_vm2, %v115_v18 }
 0x114   :  { %743 = vmatmul.msk.f32.vlgmr.msra.gmra.mxu1 %vm116_vm2, %v1005_v11 }
 0x115   :  { %748 = vmatpush.xpose.msk.msrb.mxu1 %vm116_vm2, %v250_v14 }
 0x118   :  { %v279_v19 = vpop.permute.xlu1 %278  ;;  %v1029_v20 = vpop.permute.xlu2 %793 }
 0x119   :  { %v796_v21 = vunpack.i.h.bf16 %v1029_v20  ;;  %v143_v22 = vpop.permute.xlu0 %142  ;;  %750 = vmatpush.xpose.msk.msra.mxu2 %vm116_vm2, %v279_v19  ;;  %v795_v55 = vunpack.i.l.bf16 %v1029_v20 }
 0x11a   :  { %744 = vmatpush.xpose.msk.msrb.mxu0 %vm116_vm2, %v143_v22 }
 0x11b   :  { %371 = vmatpush.msra.mxu1 %v796_v21 }
 0x11d   :  { %754 = vmatpush.xpose.msk.msrb.mxu2 %vm116_vm2, %v395_v15  ;;  %745 = vmatmul.msk.f32.vlgmr.msrb.gmra.mxu0 %vm116_vm2, %v1009_v12 }
 0x120   :  { %v277_v23 = vpop.permute.xlu1 %276 }
 0x121   :  { %v248_v24 = vpop.permute.xlu0 %247  ;;  %751 = vmatmul.msk.f32.vlgmr.msra.gmra.mxu2 %vm116_vm2, %v277_v23 }
 0x122   :  { %749 = vmatmul.msk.f32.vlgmr.msrb.gmra.mxu1 %vm116_vm2, %v248_v24  ;;  %760 = vmatpush.xpose.msk.msra.mxu2 %vm116_vm2, %v540_v16 }
 0x128   :  { %v393_v25 = vpop.permute.xlu1 %392 }
 0x129   :  { %v538_v26 = vpop.permute.xlu0 %537  ;;  %755 = vmatmul.msk.f32.vlgmr.msrb.gmra.mxu2 %vm116_vm2, %v393_v25 }
 0x130   :  { %v424_v27 = vpop.permute.xlu1 %423 }
 0x131   :  { %v569_v28 = vpop.permute.xlu0 %568  ;;  %756 = vmatpush.xpose.msk.msra.mxu0 %vm116_vm2, %v424_v27  ;;  %761 = vmatmul.msk.f32.vlgmr.msra.gmra.mxu2 %vm116_vm2, %v538_v26 }
 0x134   :  { %757 = vmatmul.msk.f32.vlgmr.msra.gmra.mxu0 %vm116_vm2, %v422_v17 }
 0x135   :  { %762 = vmatpush.xpose.msk.msrb.mxu0 %vm116_vm2, %v569_v28 }
 0x138   :  { %v567_v29 = vpop.permute.xlu1 %566 }
 0x13c   :  { %763 = vmatmul.msk.f32.vlgmr.msrb.gmra.mxu0 %vm116_vm2, %v567_v29 }
 0x140   :  { %v789_v30 = vpop.permute.xlu1 %788 }
 0x141   :  { %v790_v31 = vunpack.i.l.bf16 %v789_v30  ;;  %v791_v32 = vunpack.i.h.bf16 %v789_v30 }
 0x143   :  { %209 = vmatpush.msra.mxu3 %v790_v31 }
 0x145   :  { %235 = vmatpush.msrb.mxu3 %v791_v32 }
 0x191   :  { %v138_v33 = vpop.f32.mrf.mxu1 }
 0x192   :  { %v168_v34 = vsel %vm116_vm2, %v138_v33, -inf }
 0x193   :  { %169 = vmax.xlane.f32.xlu2 %v168_v34 }
 0x19a   :  { %v165_v35 = vpop.f32.mrf.mxu0 }
 0x19b   :  { %v171_v36 = vsel %vm116_vm2, %v165_v35, -inf }
 0x19c   :  { %172 = vmax.xlane.f32.xlu0 %v171_v36 }
 0x19f   :  { %v272_v37 = vpop.f32.mrf.mxu1 }
 0x1a0   :  { %v304_v38 = vsel %vm116_vm2, %v272_v37, -inf }
 0x1a1   :  { %305 = vmax.xlane.f32.xlu1 %v304_v38 }
 0x1a4   :  { %v301_v39 = vpop.f32.mrf.mxu2 }
 0x1a5   :  { %v307_v40 = vsel %vm116_vm2, %v301_v39, -inf }
 0x1a6   :  { %308 = vmax.xlane.f32.xlu0 %v307_v40 }
 0x1ab   :  { %614 = vrot.lane.b32.xlu2 %v1005_v11, %s947_s17 }
 0x1ac   :  { %v1052_v43 = vpop.f32.mrf.mxu2 }
 0x1ad   :  { %v449_v48 = vsel %vm116_vm2, %v1052_v43, -inf }
 0x1b1   :  { %v446_v41 = vpop.f32.mrf.mxu0 }
 0x1b2   :  { %v452_v42 = vsel %vm116_vm2, %v446_v41, -inf }
 0x1b3   :  { %453 = vmax.xlane.f32.xlu0 %v452_v42 }
 0x1b4   :  { %v562_v46 = vpop.f32.mrf.mxu2 }
 0x1b5   :  { %v594_v47 = vsel %vm116_vm2, %v562_v46, -inf }
 0x1b9   :  { %v591_v44 = vpop.f32.mrf.mxu0 }
 0x1ba   :  { %469 = vrot.lane.b32.xlu1 %v1005_v11, %s948_s18  ;;  %v597_v45 = vsel %vm116_vm2, %v591_v44, -inf }
 0x1bb   :  { %598 = vmax.xlane.f32.xlu0 %v597_v45 }
 0x1c3   :  { %595 = vmax.xlane.f32.xlu0 %v594_v47 }
 0x1d4   :  { %450 = vmax.xlane.f32.xlu2 %v449_v48 }
 0x1d7   :  { %640 = vrot.lane.b32.xlu0 %v1009_v12, %s947_s17 }
 0x1ec   :  { %495 = vrot.lane.b32.xlu2 %v1009_v12, %s948_s18 }
 0x206   :  { %v170_v49 = vpop.xlane.xlu2 %169 }
 0x207   :  { %v174_v50 = vsub.f32 %v138_v33, %v170_v49 }
 0x209   :  { %v176_v51 = vmul.f32 1.442695, %v174_v50 }
 0x20b   :  { %799 = vpow2.f32 %v176_v51 }
 0x20e   :  { %v615_v8 = vpop.permute.xlu2 %614 }
 0x20f   :  { %v173_v52 = vpop.xlane.xlu0 %172 }
 0x210   :  { %v175_v53 = vsub.f32 %v165_v35, %v173_v52 }
 0x211   :  { %v1061_v54 = vpop.eup %799 }
 0x212   :  { %v178_v56 = vmul.f32 1.442695, %v175_v53  ;;  %746 = vmatmul.msk.f32.vlgmr.msra.gmra.mxu3 %vm116_vm2, %v1061_v54  ;;  %v180_v29 = vsel %vm116_vm2, %v1061_v54, 0.0 }
 0x213   :  { %345 = vmatpush.msra.mxu3 %v795_v55 }
 0x214   :  { %801 = vpow2.f32 %v178_v56  ;;  %v306_v57 = vpop.xlane.xlu1 %305 }
 0x215   :  { %v310_v58 = vsub.f32 %v272_v37, %v306_v57 }
 0x217   :  { %v312_v59 = vmul.f32 1.442695, %v310_v58 }
 0x219   :  { %803 = vpow2.f32 %v312_v59  ;;  %v309_v60 = vpop.xlane.xlu0 %308 }
 0x21a   :  { %v802_v61 = vpop.eup %801  ;;  %v311_v62 = vsub.f32 %v301_v39, %v309_v60 }
 0x21b   :  { %747 = vmatmul.msk.f32.vlgmr.msrb.gmra.mxu3 %vm116_vm2, %v802_v61  ;;  %v183_v11 = vsel %vm116_vm2, %v802_v61, 0.0 }
 0x21c   :  { %v314_v63 = vmul.f32 1.442695, %v311_v62 }
 0x21e   :  { %805 = vpow2.f32 %v314_v63 }
 0x21f   :  { %v804_v0 = vpop.eup %803 }
 0x220   :  { %v316_v1 = vsel %vm116_vm2, %v804_v0, 0.0 }
 0x221   :  { %317 = vadd.xlane.f32.xlu1 %v316_v1  ;;  %v684_v1 = vld [vmem:[#allocation9 + $0x18] sm:$0xff] }
 0x222   :  { %707 = vmatpush.msrb.mxu2 %v684_v1 }
 0x223   :  { %752 = vmatmul.msk.f32.vlgmr.msra.gmra.mxu3 %vm116_vm2, %v804_v0 }
 0x224   :  { %v806_v2 = vpop.eup %805 }
 0x225   :  { %753 = vmatmul.msk.f32.vlgmr.msra.gmra.mxu1 %vm116_vm2, %v806_v2  ;;  %v319_v5 = vsel %vm116_vm2, %v806_v2, 0.0  ;;  %v683_v2 = vld [vmem:[#allocation9 + $0x10] sm:$0xff] }
 0x226   :  { %v454_v3 = vpop.xlane.xlu0 %453  ;;  %708 = vmatpush.msrb.mxu2 %v683_v2 }
 0x227   :  { %v456_v4 = vsub.f32 %v446_v41, %v454_v3  ;;  %v682_v3 = vld [vmem:[#allocation9 + $0x8] sm:$0xff] }
 0x228   :  { %709 = vmatpush.msrb.mxu2 %v682_v3 }
 0x229   :  { %v459_v6 = vmul.f32 1.442695, %v456_v4  ;;  %320 = vadd.xlane.f32.xlu1 %v319_v5  ;;  %v681_v4 = vld [vmem:[#allocation9] sm:$0xff] }
 0x22a   :  { %710 = vmatpush.msrb.mxu2 %v681_v4 }
 0x22b   :  { %807 = vpow2.f32 %v459_v6 }
 0x22c   :  { %v470_v7 = vpop.permute.xlu1 %469 }
 0x22d   :  { %490 = vmatpush.msrb.mxu3 %v470_v7 }
 0x22e   :  { %v599_v9 = vpop.xlane.xlu0 %598 }
 0x22f   :  { %635 = vmatpush.msra.mxu3 %v615_v8  ;;  %v601_v10 = vsub.f32 %v591_v44, %v599_v9 }
 0x231   :  { %v808_v12 = vpop.eup %807  ;;  %v604_v13 = vmul.f32 1.442695, %v601_v10  ;;  %184 = vadd.xlane.f32.xlu1 %v183_v11  ;;  %v798_v10 = vld [vmem:[%s1104_s4] ss:$0 sm:$0xff] }
 0x232   :  { %v464_v14 = vsel %vm116_vm2, %v808_v12, 0.0 }
 0x233   :  { %809 = vpow2.f32 %v604_v13  ;;  %465 = vadd.xlane.f32.xlu2 %v464_v14 }
 0x236   :  { %v596_v15 = vpop.xlane.xlu0 %595 }
 0x237   :  { %v600_v16 = vsub.f32 %v562_v46, %v596_v15 }
 0x239   :  { %v810_v17 = vpop.eup %809  ;;  %v602_v18 = vmul.f32 1.442695, %v600_v16 }
 0x23a   :  { %v609_v19 = vsel %vm116_vm2, %v810_v17, 0.0 }
 0x23b   :  { %811 = vpow2.f32 %v602_v18  ;;  %610 = vadd.xlane.f32.xlu1 %v609_v19 }
 0x241   :  { %v812_v20 = vpop.eup %811 }
 0x242   :  { %v606_v21 = vsel %vm116_vm2, %v812_v20, 0.0 }
 0x243   :  { %607 = vadd.xlane.f32.xlu0 %v606_v21 }
 0x247   :  { %v451_v22 = vpop.xlane.xlu2 %450 }
 0x248   :  { %v455_v23 = vsub.f32 %v1052_v43, %v451_v22 }
 0x249   :  { %v641_v26 = vpop.permute.xlu0 %640 }
 0x24a   :  { %v457_v24 = vmul.f32 1.442695, %v455_v23 }
 0x24c   :  { %813 = vpow2.f32 %v457_v24 }
 0x24f   :  { %v496_v25 = vpop.permute.xlu2 %495 }
 0x250   :  { %516 = vmatpush.msrb.mxu1 %v496_v25 }
 0x251   :  { %759 = vmatmul.msk.f32.vlgmr.msrb.gmra.mxu1 %vm116_vm2, %v808_v12 }
 0x252   :  { %v814_v27 = vpop.eup %813  ;;  %661 = vmatpush.msra.mxu1 %v641_v26 }
 0x253   :  { %758 = vmatmul.msk.f32.vlgmr.msrb.gmra.mxu3 %vm116_vm2, %v814_v27  ;;  %v461_v28 = vsel %vm116_vm2, %v814_v27, 0.0 }
 0x254   :  { %462 = vadd.xlane.f32.xlu2 %v461_v28 }
 0x259   :  { %765 = vmatmul.msk.f32.vlgmr.msra.gmra.mxu1 %vm116_vm2, %v810_v17 }
 0x25b   :  { %764 = vmatmul.msk.f32.vlgmr.msra.gmra.mxu3 %vm116_vm2, %v812_v20 }
 0x25c   :  { %181 = vadd.xlane.f32.xlu2 %v180_v29 }
 0x294   :  { %v318_v30 = vpop.xlane.xlu1 %317 }
 0x295   :  { %v211_v31 = vpop.f32.mrf.mxu3  ;;  %815 = vrcp.f32 %v318_v30 }
 0x29b   :  { %v816_v35 = vpop.eup %815 }
 0x29c   :  { %v321_v32 = vpop.xlane.xlu1 %320 }
 0x29e   :  { %v237_v33 = vpop.f32.mrf.mxu3 }
 0x2a2   :  { %v373_v40 = vpop.f32.mrf.mxu1 }
 0x2a4   :  { %v185_v34 = vpop.xlane.xlu1 %184 }
 0x2a5   :  { %817 = vrcp.f32 %v185_v34 }
 0x2a6   :  { %819 = vrcp.f32 %v321_v32  ;;  %v347_v36 = vpop.f32.mrf.mxu3  ;;  %v466_v43 = vpop.xlane.xlu2 %465 }
 0x2a7   :  { %v376_v37 = vmul.f32 %v816_v35, %v347_v36 }
 0x2a9   :  { %380 = vrot.lane.b32.xlu0 %v376_v37, %s935_s27 }
 0x2ab   :  { %v818_v38 = vpop.eup %817 }
 0x2ac   :  { %v820_v39 = vpop.eup %819  ;;  %v241_v41 = vmul.f32 %v818_v38, %v237_v33 }
 0x2ad   :  { %v377_v42 = vmul.f32 %v820_v39, %v373_v40 }
 0x2ae   :  { %243 = vst.msk [vmem:[#allocation3 + $0x8] sm:$0xff] %vm116_vm2, %v241_v41  ;;  %v611_v45 = vpop.xlane.xlu1 %610 }
 0x2af   :  { %821 = vrcp.f32 %v611_v45 }
 0x2b1   :  { %382 = vrot.lane.b32.xlu0 %v377_v42, %s935_s27 }
 0x2b5   :  { %v822_v48 = vpop.eup %821 }
 0x2b6   :  { %v608_v50 = vpop.xlane.xlu0 %607 }
 0x2c7   :  { %v463_v44 = vpop.xlane.xlu2 %462 }
 0x2c8   :  { %823 = vrcp.f32 %v463_v44 }
 0x2ce   :  { %v518_v46 = vpop.f32.mrf.mxu1  ;;  %v824_v49 = vpop.eup %823 }
 0x2cf   :  { %v182_v47 = vpop.xlane.xlu2 %181 }
 0x2d0   :  { %825 = vrcp.f32 %v182_v47 }
 0x2d1   :  { %827 = vrcp.f32 %v466_v43 }
 0x2d2   :  { %829 = vrcp.f32 %v608_v50 }
 0x2d6   :  { %v826_v51 = vpop.eup %825  ;;  %v492_v52 = vpop.f32.mrf.mxu3 }
 0x2d7   :  { %v663_v53 = vpop.f32.mrf.mxu1  ;;  %v240_v54 = vmul.f32 %v826_v51, %v211_v31  ;;  %v521_v55 = vmul.f32 %v824_v49, %v492_v52  ;;  %v828_v57 = vpop.eup %827 }
 0x2d8   :  { %v667_v56 = vmul.f32 %v822_v48, %v663_v53  ;;  %v830_v58 = vpop.eup %829  ;;  %v522_v60 = vmul.f32 %v828_v57, %v518_v46 }
 0x2d9   :  { %242 = vst.msk [vmem:[#allocation3] sm:$0xff] %vm116_vm2, %v240_v54  ;;  %525 = vrot.lane.b32.xlu2 %v521_v55, %s949_s19 }
 0x2da   :  { %672 = vrot.lane.b32.xlu0 %v667_v56, %s950_s20 }
 0x2de   :  { %v637_v59 = vpop.f32.mrf.mxu3 }
 0x2df   :  { %v666_v61 = vmul.f32 %v830_v58, %v637_v59 }
 0x2e1   :  { %527 = vrot.lane.b32.xlu2 %v522_v60, %s949_s19  ;;  %670 = vrot.lane.b32.xlu1 %v666_v61, %s950_s20 }
 0x31b   :  { %v381_v62 = vpop.permute.xlu0 %380 }
 0x31c   :  { %387 = vst.msk [vmem:[#allocation3] sm:$0xff] %vm386_vm3, %v381_v62 }
 0x323   :  { %v383_v63 = vpop.permute.xlu0 %382 }
 0x324   :  { %388 = vst.msk [vmem:[#allocation3 + $0x8] sm:$0xff] %vm386_vm3, %v383_v63 }
 0x333   :  { %v526_v0 = vpop.permute.xlu2 %525 }
 0x334   :  { %532 = vst.msk [vmem:[#allocation3] sm:$0xff] %vm531_vm4, %v526_v0 }
 0x33b   :  { %v528_v5 = vpop.permute.xlu2 %527 }
 0x33c   :  { %533 = vst.msk [vmem:[#allocation3 + $0x8] sm:$0xff] %vm531_vm4, %v528_v5 }
 0x34c   :  { %v673_v6 = vpop.permute.xlu0 %672 }
 0x34d   :  { %678 = vst.msk [vmem:[#allocation3 + $0x8] sm:$0xff] %vm676_vm5, %v673_v6 }
 0x353   :  { %v671_v7 = vpop.permute.xlu1 %670 }
 0x354   :  { %677 = vst.msk [vmem:[#allocation3] sm:$0xff] %vm676_vm5, %v671_v7  ;;  %v680_v9 = vld [vmem:[#allocation3 + $0x8] sm:$0xff] }
 0x35b   :  { %v679_v8 = vld [vmem:[#allocation3] sm:$0xff] }
 0x35c   :  { %766 = vmatmul.msk.f32.vlgmr.msrb.gmra.mxu2 %vm78_vm0, %v679_v8 }
 0x364   :  { %767 = vmatmul.msk.f32.gmra.mxu2 %vm78_vm0, %v680_v9 }
 0x3df   :  { %v712_v11 = vpop.f32.mrf.mxu2 }
 0x3e0   :  { %v713_v12 = vadd.f32 %v798_v10, %v712_v11 }
 0x3e2   :  { %718 = vst.msk [vmem:[#allocation10] sm:$0xff] %vm78_vm0, %v713_v12 }
 0x3e7   :  { %v715_v13 = vpop.f32.mrf.mxu2 }
 0x3e8   :  { %v716_v14 = vadd.f32 %v798_v10, %v715_v13 }
 0x3ea   :  { %719 = vst.msk [vmem:[#allocation10 + $0x8] sm:$0xff] %vm78_vm0, %v716_v14 }
 0x3eb   :  { %732 = dma.vmem_to_hbm [thread:$0]  %s725_s24, 256, %s727_s29, [#allocation6], %s934_s26, %s934_s26, %s935_s27  }
 0x3ec   :  { %931 = dma.done.wait [#allocation6], 256  }
 0x3ed   :  { %932 = vsyncadd [#allocation6], 4294967040 }
 0x3ee   :  { %737 = vsyncpa [#allocation5], 1 }
 0x3ef   :  { %738 = vsyncpa [#allocation8], 1 }
 0x3f0   :  { %739 = vsyncpa [#allocation6], 1 }

</bundles_post_ra>
